<compile_context>
chip_gen: v6e
topology: v6e:2x2x1
jax: 0.10.0
libtpu: 0.0.40
codegen_flags: <defaults>
</compile_context>

<pallas_src>
import functools

import jax
import jax.numpy as jnp
from jax.experimental import pallas as pl
from jax.experimental.pallas import tpu as pltpu

_LANE = 128
_SUBLANE = 8


def _round_up(x, m):
    return ((x + m - 1) // m) * m


def _device_kind():
    try:
        return jax.devices()[0].device_kind.lower()
    except Exception:
        return ""


def _num_tensorcores():
    kind = _device_kind()
    # v7x (and v4 megacore) expose 2 TensorCores per chip; v5e/v6e have 1.
    return 2 if ("v7" in kind or "7x" in kind or "v4" in kind) else 1


def _act_dtype():
    # v5e has no bf16 VPU -> keep the elementwise epilogues in f32 there.
    return jnp.float32 if "v5" in _device_kind() else jnp.bfloat16


def _leaky_relu(h, slope=0.2):
    return jnp.where(h > 0, h, slope * h)


def generator_kernel(x_ref, w1_ref, b1_ref, w2_ref, b2_ref, w3_ref, b3_ref,
                     out_ref, *, act_dtype):
    """Fused 3-layer MLP on one batch tile.

    bf16 operands feed the MXU, accumulation is f32, LeakyReLU runs in
    `act_dtype` (bf16 on v6e/v7x, f32 on v5e), and only the bf16 re-cast feeds
    the next dot. Final store casts the f32 accumulator to out_ref.dtype.
    """
    x = x_ref[...].astype(jnp.bfloat16)          # in-kernel cast (no wrapper pass)
    h = jnp.dot(x, w1_ref[...], preferred_element_type=jnp.float32) + b1_ref[...]
    h = _leaky_relu(h.astype(act_dtype)).astype(jnp.bfloat16)
    h = jnp.dot(h, w2_ref[...], preferred_element_type=jnp.float32) + b2_ref[...]
    h = _leaky_relu(h.astype(act_dtype)).astype(jnp.bfloat16)
    h = jnp.dot(h, w3_ref[...], preferred_element_type=jnp.float32) + b3_ref[...]
    out_ref[...] = h.astype(out_ref.dtype)


def init_generator_params(key, input_dim, output_dim):
    """Deterministic init matching nn.Linear shapes (stored transposed: (in, out))."""
    dims = [(input_dim, 128), (128, 256), (256, output_dim)]
    params = {}
    for idx, (din, dout) in enumerate(dims, start=1):
        key, kw, kb = jax.random.split(key, 3)
        bound = 1.0 / jnp.sqrt(din)
        # PyTorch Linear stores weight as (out, in); we store its transpose (in, out).
        params[f"w{idx}"] = jax.random.uniform(
            kw, (din, dout), jnp.float32, minval=-bound, maxval=bound)
        params[f"b{idx}"] = jax.random.uniform(
            kb, (1, dout), jnp.float32, minval=-bound, maxval=bound)
    return params


def prepare_generator_params(params):
    """One-time prep (hoisted out of the forward path):
    bf16 MXU weights, f32 biases, output layer zero-padded to a multiple of 128
    so the kernel's output stores are lane-dense / unmasked.
    Returns (prepped_params, output_dim)."""
    out_dim = params["w3"].shape[1]
    out_pad = _round_up(out_dim, _LANE)
    h2_dim = params["w3"].shape[0]
    prepped = {
        "w1": params["w1"].astype(jnp.bfloat16),
        "b1": params["b1"].reshape(1, -1).astype(jnp.float32),
        "w2": params["w2"].astype(jnp.bfloat16),
        "b2": params["b2"].reshape(1, -1).astype(jnp.float32),
        "w3": jnp.zeros((h2_dim, out_pad), jnp.bfloat16).at[:, :out_dim].set(
            params["w3"].astype(jnp.bfloat16)),
        "b3": jnp.zeros((1, out_pad), jnp.float32).at[:, :out_dim].set(
            params["b3"].reshape(1, -1).astype(jnp.float32)),
    }
    return prepped, out_dim


def generator_forward(x, prepped, output_dim, *, tile_b=None,
                      out_dtype=jnp.bfloat16):
    """x: (B, input_dim) float32.  `prepped` from prepare_generator_params (once).

    out_dtype=jnp.bfloat16 halves the largest HBM stream (accumulation stays f32);
    pass jnp.float32 for exact output-dtype parity with the PyTorch module."""
    B, in_dim = x.shape
    h1_dim = prepped["w1"].shape[1]     # 128
    h2_dim = prepped["w2"].shape[1]     # 256
    out_pad = prepped["w3"].shape[1]    # output_dim rounded up to 128

    # --- batch tiling --------------------------------------------------------
    n_cores = _num_tensorcores()
    if tile_b is None:
        cap = 2048                       # still only a few MB of VMEM at these widths
        if n_cores > 1 and B >= 32:
            # keep >= n_cores grid steps so megacore can shard the batch axis
            cap = min(cap, _round_up(pl.cdiv(B, n_cores), 16))
        # multiple-of-16 tiles match bf16 (16,128) sublane packing; fall back to 8
        # for tiny batches to avoid padding rows.
        tile_b = min(_round_up(B, 16) if B >= 16 else _round_up(B, _SUBLANE), cap)
    tile_b = max(_SUBLANE, _round_up(tile_b, _SUBLANE))
    B_pad = _round_up(B, tile_b)
    if B_pad != B:
        x = jnp.pad(x, ((0, B_pad - B), (0, 0)))
    grid = (B_pad // tile_b,)

    def x_map(i):
        return (i, 0)

    def rep_map(i):     # weights/biases: same block every step (kept resident)
        return (0, 0)

    out_bytes = jnp.dtype(out_dtype).itemsize
    x_bytes = jnp.dtype(x.dtype).itemsize

    # Double-buffered x/out tiles + (double-buffered but tiny) bf16 weights /
    # f32 biases + f32 accumulators and bf16 feed copies of the intermediates.
    buf_bytes = (
        2 * tile_b * in_dim * x_bytes
        + 2 * tile_b * out_pad * out_bytes
        + 2 * 2 * (in_dim * h1_dim + h1_dim * h2_dim + h2_dim * out_pad)
        + 2 * 4 * (h1_dim + h2_dim + out_pad)
        + tile_b * (h1_dim + h2_dim) * (4 + 2)
        + tile_b * out_pad * 4
    )
    # Clamp well below v7x's 64 MiB physical VMEM (32 MiB scoped default).
    vmem_limit = int(min(max(2 * buf_bytes, 16 << 20), 40 << 20))

    cost = pl.CostEstimate(
        flops=2 * B_pad * (in_dim * h1_dim + h1_dim * h2_dim + h2_dim * out_pad),
        transcendentals=0,
        bytes_accessed=(B_pad * in_dim * x_bytes
                        + 2 * (in_dim * h1_dim + h1_dim * h2_dim + h2_dim * out_pad)
                        + 4 * (h1_dim + h2_dim + out_pad)
                        + B_pad * out_pad * out_bytes),
    )

    kernel = functools.partial(generator_kernel, act_dtype=_act_dtype())

    out_padded = pl.pallas_call(
        kernel,
        out_shape=jax.ShapeDtypeStruct((B_pad, out_pad), out_dtype),
        grid_spec=pltpu.PrefetchScalarGridSpec(
            num_scalar_prefetch=0,
            grid=grid,
            in_specs=[
                pl.BlockSpec((tile_b, in_dim), x_map),
                pl.BlockSpec((in_dim, h1_dim), rep_map),
                pl.BlockSpec((1, h1_dim), rep_map),
                pl.BlockSpec((h1_dim, h2_dim), rep_map),
                pl.BlockSpec((1, h2_dim), rep_map),
                pl.BlockSpec((h2_dim, out_pad), rep_map),
                pl.BlockSpec((1, out_pad), rep_map),
            ],
            out_specs=pl.BlockSpec((tile_b, out_pad), x_map),
        ),
        compiler_params=pltpu.CompilerParams(
            dimension_semantics=("parallel",),
            vmem_limit_bytes=vmem_limit,
        ),
        cost_estimate=cost,
    )(x, prepped["w1"], prepped["b1"], prepped["w2"], prepped["b2"],
      prepped["w3"], prepped["b3"])

    # Trim padding.  If the consumer can work with the padded slab directly
    # (padded output columns are exact zeros), return out_padded and skip this
    # extra output-sized HBM pass.
    if B_pad == B and out_pad == output_dim:
        return out_padded
    return out_padded[:B, :output_dim]


def reference_forward(x, params):
    h = x @ params["w1"] + params["b1"]
    h = jnp.where(h > 0, h, 0.2 * h)
    h = h @ params["w2"] + params["b2"]
    h = jnp.where(h > 0, h, 0.2 * h)
    return h @ params["w3"] + params["b3"]


if __name__ == "__main__":
    key = jax.random.PRNGKey(0)
    key, kx, kp = jax.random.split(key, 3)

    batch, input_dim, output_dim = 8, 32, 64
    x = jax.random.normal(kx, (batch, input_dim), jnp.float32)
    params = init_generator_params(kp, input_dim, output_dim)

    # One-time parameter prep (bf16 cast + lane padding) hoisted out of forward.
    prepped, out_dim = prepare_generator_params(params)
    fwd = jax.jit(lambda xx: generator_forward(xx, prepped, out_dim))

    out = jax.block_until_ready(fwd(x))

    ref = reference_forward(x, params)
    assert out.shape == (batch, output_dim)
    # bf16 MXU operands + bf16 output (f32 accumulation) => loose tolerance vs f32 ref.
    out_f32 = out.astype(jnp.float32)
    err = float(jnp.max(jnp.abs(out_f32 - ref)))
    assert jnp.allclose(out_f32, ref, atol=5e-2, rtol=5e-2), err

    print("KERNEL_OK")
</pallas_src>

<mosaic_0001>
module attributes {stable_mosaic.version = 11 : i64} {
  func.func @generator_kernel(%arg0: i32, %arg1: memref<8x32xf32, #tpu.memory_space<vmem>>, %arg2: memref<32x128xbf16, #tpu.memory_space<vmem>>, %arg3: memref<1x128xf32, #tpu.memory_space<vmem>>, %arg4: memref<128x256xbf16, #tpu.memory_space<vmem>>, %arg5: memref<1x256xf32, #tpu.memory_space<vmem>>, %arg6: memref<256x128xbf16, #tpu.memory_space<vmem>>, %arg7: memref<1x128xf32, #tpu.memory_space<vmem>>, %arg8: memref<8x128xbf16, #tpu.memory_space<vmem>>) attributes {dimension_semantics = [#tpu.dimension_semantics<parallel>], iteration_bounds = array<i64: 1>, scalar_prefetch = 0 : i64, scratch_operands = 0 : i64, tpu.core_type = #tpu.core_type<tc>, window_params = [{transform_indices = @transform_0, window_bounds = array<i64: 8, 32>}, {pipeline_mode = #tpu.pipeline_mode<synchronous>, transform_indices = @transform_1, window_bounds = array<i64: 32, 128>}, {pipeline_mode = #tpu.pipeline_mode<synchronous>, transform_indices = @transform_2, window_bounds = array<i64: 1, 128>}, {pipeline_mode = #tpu.pipeline_mode<synchronous>, transform_indices = @transform_3, window_bounds = array<i64: 128, 256>}, {pipeline_mode = #tpu.pipeline_mode<synchronous>, transform_indices = @transform_4, window_bounds = array<i64: 1, 256>}, {pipeline_mode = #tpu.pipeline_mode<synchronous>, transform_indices = @transform_5, window_bounds = array<i64: 256, 128>}, {pipeline_mode = #tpu.pipeline_mode<synchronous>, transform_indices = @transform_6, window_bounds = array<i64: 1, 128>}, {transform_indices = @transform_7, window_bounds = array<i64: 8, 128>}]} {
    %c0 = arith.constant 0 : index
    %c0_0 = arith.constant 0 : index
    %0 = vector.load %arg1[%c0, %c0_0] : memref<8x32xf32, #tpu.memory_space<vmem>>, vector<8x32xf32>
    %1 = arith.truncf %0 : vector<8x32xf32> to vector<8x32xbf16>
    %c0_1 = arith.constant 0 : index
    %c0_2 = arith.constant 0 : index
    %2 = vector.load %arg2[%c0_1, %c0_2] : memref<32x128xbf16, #tpu.memory_space<vmem>>, vector<32x128xbf16>
    %cst = arith.constant dense<0.000000e+00> : vector<8x128xf32>
    %3 = tpu.matmul %1, %2, %cst {dimension_numbers = #tpu.dot_dimension_numbers<[1], [0], [0], [1], [0, 0, 1, 1], [], []>} : vector<8x32xbf16>, vector<32x128xbf16>, vector<8x128xf32> -> vector<8x128xf32>
    %c0_3 = arith.constant 0 : index
    %c0_4 = arith.constant 0 : index
    %4 = vector.load %arg3[%c0_3, %c0_4] : memref<1x128xf32, #tpu.memory_space<vmem>>, vector<1x128xf32>
    %5 = vector.broadcast %4 : vector<1x128xf32> to vector<8x128xf32>
    %6 = arith.addf %3, %5 : vector<8x128xf32>
    %7 = arith.truncf %6 : vector<8x128xf32> to vector<8x128xbf16>
    %cst_5 = arith.constant 0.000000e+00 : bf16
    %8 = vector.broadcast %cst_5 : bf16 to vector<8x128xbf16>
    %9 = arith.cmpf ogt, %7, %8 : vector<8x128xbf16>
    %cst_6 = arith.constant 2.001950e-01 : bf16
    %10 = vector.broadcast %cst_6 : bf16 to vector<8x128xbf16>
    %11 = arith.mulf %10, %7 : vector<8x128xbf16>
    %12 = arith.select %9, %7, %11 : vector<8x128xi1>, vector<8x128xbf16>
    %c0_7 = arith.constant 0 : index
    %c0_8 = arith.constant 0 : index
    %13 = vector.load %arg4[%c0_7, %c0_8] : memref<128x256xbf16, #tpu.memory_space<vmem>>, vector<128x256xbf16>
    %cst_9 = arith.constant dense<0.000000e+00> : vector<8x256xf32>
    %14 = tpu.matmul %12, %13, %cst_9 {dimension_numbers = #tpu.dot_dimension_numbers<[1], [0], [0], [1], [0, 0, 1, 1], [], []>} : vector<8x128xbf16>, vector<128x256xbf16>, vector<8x256xf32> -> vector<8x256xf32>
    %c0_10 = arith.constant 0 : index
    %c0_11 = arith.constant 0 : index
    %15 = vector.load %arg5[%c0_10, %c0_11] : memref<1x256xf32, #tpu.memory_space<vmem>>, vector<1x256xf32>
    %16 = vector.broadcast %15 : vector<1x256xf32> to vector<8x256xf32>
    %17 = arith.addf %14, %16 : vector<8x256xf32>
    %18 = arith.truncf %17 : vector<8x256xf32> to vector<8x256xbf16>
    %cst_12 = arith.constant 0.000000e+00 : bf16
    %19 = vector.broadcast %cst_12 : bf16 to vector<8x256xbf16>
    %20 = arith.cmpf ogt, %18, %19 : vector<8x256xbf16>
    %cst_13 = arith.constant 2.001950e-01 : bf16
    %21 = vector.broadcast %cst_13 : bf16 to vector<8x256xbf16>
    %22 = arith.mulf %21, %18 : vector<8x256xbf16>
    %23 = arith.select %20, %18, %22 : vector<8x256xi1>, vector<8x256xbf16>
    %c0_14 = arith.constant 0 : index
    %c0_15 = arith.constant 0 : index
    %24 = vector.load %arg6[%c0_14, %c0_15] : memref<256x128xbf16, #tpu.memory_space<vmem>>, vector<256x128xbf16>
    %cst_16 = arith.constant dense<0.000000e+00> : vector<8x128xf32>
    %25 = tpu.matmul %23, %24, %cst_16 {dimension_numbers = #tpu.dot_dimension_numbers<[1], [0], [0], [1], [0, 0, 1, 1], [], []>} : vector<8x256xbf16>, vector<256x128xbf16>, vector<8x128xf32> -> vector<8x128xf32>
    %c0_17 = arith.constant 0 : index
    %c0_18 = arith.constant 0 : index
    %26 = vector.load %arg7[%c0_17, %c0_18] : memref<1x128xf32, #tpu.memory_space<vmem>>, vector<1x128xf32>
    %27 = vector.broadcast %26 : vector<1x128xf32> to vector<8x128xf32>
    %28 = arith.addf %25, %27 : vector<8x128xf32>
    %29 = arith.truncf %28 : vector<8x128xf32> to vector<8x128xbf16>
    %c0_19 = arith.constant 0 : index
    %c0_20 = arith.constant 0 : index
    %30 = vector.load %arg8[%c0_19, %c0_20] : memref<8x128xbf16, #tpu.memory_space<vmem>>, vector<8x128xbf16>
    tpu.vector_store %arg8[%c0_19, %c0_20], %29 {strides = array<i32>} : memref<8x128xbf16, #tpu.memory_space<vmem>>, vector<8x128xbf16>,
    return
  }
  func.func @transform_0(%arg0: i32) -> (i32, i32) {
    %c0_i32 = arith.constant 0 : i32
    %c0_i32_0 = arith.constant 0 : i32
    return %arg0, %c0_i32 : i32, i32
  }
  func.func @transform_1(%arg0: i32) -> (i32, i32) {
    %c0_i32 = arith.constant 0 : i32
    %c0_i32_0 = arith.constant 0 : i32
    %c0_i32_1 = arith.constant 0 : i32
    return %c0_i32, %c0_i32_0 : i32, i32
  }
  func.func @transform_2(%arg0: i32) -> (i32, i32) {
    %c0_i32 = arith.constant 0 : i32
    %c0_i32_0 = arith.constant 0 : i32
    %c0_i32_1 = arith.constant 0 : i32
    return %c0_i32, %c0_i32_0 : i32, i32
  }
  func.func @transform_3(%arg0: i32) -> (i32, i32) {
    %c0_i32 = arith.constant 0 : i32
    %c0_i32_0 = arith.constant 0 : i32
    %c0_i32_1 = arith.constant 0 : i32
    return %c0_i32, %c0_i32_0 : i32, i32
  }
  func.func @transform_4(%arg0: i32) -> (i32, i32) {
    %c0_i32 = arith.constant 0 : i32
    %c0_i32_0 = arith.constant 0 : i32
    %c0_i32_1 = arith.constant 0 : i32
    return %c0_i32, %c0_i32_0 : i32, i32
  }
  func.func @transform_5(%arg0: i32) -> (i32, i32) {
    %c0_i32 = arith.constant 0 : i32
    %c0_i32_0 = arith.constant 0 : i32
    %c0_i32_1 = arith.constant 0 : i32
    return %c0_i32, %c0_i32_0 : i32, i32
  }
  func.func @transform_6(%arg0: i32) -> (i32, i32) {
    %c0_i32 = arith.constant 0 : i32
    %c0_i32_0 = arith.constant 0 : i32
    %c0_i32_1 = arith.constant 0 : i32
    return %c0_i32, %c0_i32_0 : i32, i32
  }
  func.func @transform_7(%arg0: i32) -> (i32, i32) {
    %c0_i32 = arith.constant 0 : i32
    %c0_i32_0 = arith.constant 0 : i32
    return %arg0, %c0_i32 : i32, i32
  }
}

</mosaic_0001>

<bundles_post_ra>
// kernel: _lambda_.1
= control target key start
LH: loop header
LB: loop body
LE: loop exit
PB: predicated region body
PF: predicated region fallthrough
CT: control target
= control target key end

     0   :  { %12 = vsyncpa [#allocation3], 0  ;;  %s853_s0 = inlined_call_operand.hbm [shape: f32[8,32], index: 0, kind: input, shape index: {}]   ;;  %s854_s1 = inlined_call_operand.hbm [shape: bf16[32,128], index: 1, kind: input, shape index: {}]   ;;  %s855_s2 = inlined_call_operand.hbm [shape: f32[1,128], index: 2, kind: input, shape index: {}]   ;;  %s856_s3 = inlined_call_operand.hbm [shape: bf16[128,256], index: 3, kind: input, shape index: {}]   ;;  %s857_s4 = inlined_call_operand.vmem [shape: f32[1,256], index: 4, kind: input, shape index: {}]   ;;  %s858_s5 = inlined_call_operand.hbm [shape: bf16[256,128], index: 5, kind: input, shape index: {}]   ;;  %s859_s6 = inlined_call_operand.vmem [shape: f32[1,128], index: 6, kind: input, shape index: {}]   ;;  %s860_s7 = inlined_call_operand.hbm [shape: bf16[8,128], index: 7, kind: output, shape index: {}]  }
   0x1   :  { %13 = vsyncpa [#allocation6], 0 }
   0x2   :  { %14 = vsyncpa [#allocation9], 0 }
   0x3   :  { %15 = vsyncpa [#allocation4], 0  ;;  %s770_s24 = smov [#allocation5]  }
   0x4   :  { %s31_s25 = sshll.u32 %s770_s24, 4  ;;  %s32_s25 = int_to_ptr.vmem [resolvable:$true] %s31_s25 }
   0x5   :  { %s650_s26 = scalar_lea.vmem %s32_s25, 256  ;;  %p655_p1 = scmp.lt.s32.totalorder %s32_s25, %s32_s25 }
   0x6   :  { %p651_p0 = scmp.ne.s32.totalorder %s32_s25, %s650_s26  ;;  %p656_p2 = scmp.lt.s32.totalorder %s650_s26, %s650_s26 }
   0x8   :  { %p657_p3 = por %p656_p2, %p655_p1 }
   0xa   :  { %p658_p4 = pnand %p657_p3, %p651_p0 }
   0xc   :  { %661 = shalt.err (!%p658_p4)
}
   0xd   :  { %s771_s27 = smov 64   ;;  %s772_s28 = smov 4  }
   0xe   :  { %37 = dma.hbm_to_vmem [thread:$0]  %s854_s1, 256, %s32_s25, [#allocation6], %s771_s27, %s771_s27, %s772_s28  }
   0xf   :  { %s773_s8 = smov [#allocation8]  }
  0x10   :  { %s53_s9 = sshll.u32 %s773_s8, 4  ;;  %s54_s9 = int_to_ptr.vmem [resolvable:$true] %s53_s9 }
  0x11   :  { %s670_s10 = scalar_lea.vmem %s54_s9, 2048  ;;  %p675_p6 = scmp.lt.s32.totalorder %s54_s9, %s54_s9 }
  0x12   :  { %p671_p5 = scmp.ne.s32.totalorder %s54_s9, %s670_s10  ;;  %p676_p7 = scmp.lt.s32.totalorder %s670_s10, %s670_s10 }
  0x14   :  { %p677_p8 = por %p676_p7, %p675_p6 }
  0x16   :  { %p678_p9 = pnand %p677_p8, %p671_p5 }
  0x18   :  { %681 = shalt.err (!%p678_p9)
}
  0x19   :  { %s774_s11 = smov 128   ;;  %s775_s12 = smov 8  }
  0x1a   :  { %59 = dma.hbm_to_vmem [thread:$0]  %s856_s3, 2048, %s54_s9, [#allocation9], %s774_s11, %s774_s11, %s775_s12  }
  0x1b   :  { %s776_s15 = smov [#allocation2]   ;;  %s777_s17 = smov [#allocation7]  }
  0x1c   :  { %s22_s16 = sshll.u32 %s776_s15, 4  ;;  %s44_s1 = sshll.u32 %s777_s17, 4  ;;  %s23_s16 = int_to_ptr.vmem [resolvable:$true] %s22_s16  ;;  %s45_s1 = int_to_ptr.vmem [resolvable:$true] %s44_s1 }
  0x1d   :  { %s690_s18 = scalar_lea.vmem %s23_s16, 128  ;;  %p695_p11 = scmp.lt.s32.totalorder %s23_s16, %s23_s16 }
  0x1e   :  { %p691_p10 = scmp.ne.s32.totalorder %s23_s16, %s690_s18  ;;  %p696_p12 = scmp.lt.s32.totalorder %s690_s18, %s690_s18 }
  0x20   :  { %p697_p13 = por %p696_p12, %p695_p11 }
  0x22   :  { %p698_p0 = pnand %p697_p13, %p691_p10 }
  0x24   :  { %701 = shalt.err (!%p698_p0)
}
  0x25   :  { %25 = dma.hbm_to_vmem [thread:$0]  %s853_s0, 128, %s23_s16, [#allocation3]  }
  0x26   :  { %s710_s21 = scalar_lea.vmem %s45_s1, 16  ;;  %s714_s3 = scalar_lea.vmem %s45_s1, 32 }
  0x27   :  { %p711_p1 = scmp.ne.s32.totalorder %s45_s1, %s710_s21  ;;  %p715_p2 = scmp.lt.s32.totalorder %s45_s1, %s45_s1 }
  0x28   :  { %p716_p3 = scmp.lt.s32.totalorder %s714_s3, %s710_s21 }
  0x2a   :  { %p717_p4 = por %p716_p3, %p715_p2 }
  0x2c   :  { %p718_p5 = pnand %p717_p4, %p711_p1 }
  0x2e   :  { %721 = shalt.err (!%p718_p5)
}
  0x2f   :  { %47 = dma.hbm_to_vmem [thread:$0]  %s855_s2, 16, %s45_s1, [#allocation6]  }
  0x30   :  { %s778_s24 = smov [#allocation10]  }
  0x31   :  { %s67_s25 = sshll.u32 %s778_s24, 4  ;;  %s68_s25 = int_to_ptr.vmem [resolvable:$true] %s67_s25 }
  0x32   :  { %s730_s26 = scalar_lea.vmem %s68_s25, 2048  ;;  %p735_p7 = scmp.lt.s32.totalorder %s68_s25, %s68_s25 }
  0x33   :  { %p731_p6 = scmp.ne.s32.totalorder %s68_s25, %s730_s26  ;;  %p736_p8 = scmp.lt.s32.totalorder %s730_s26, %s730_s26 }
  0x35   :  { %p737_p9 = por %p736_p8, %p735_p7 }
  0x37   :  { %p738_p10 = pnand %p737_p9, %p731_p6 }
  0x39   :  { %741 = shalt.err (!%p738_p10)
}
  0x3a   :  { %73 = dma.hbm_to_vmem [thread:$0]  %s858_s5, 2048, %s68_s25, [#allocation9], %s771_s27, %s771_s27, %s772_s28  }
  0x3b   :  { %762 = dma.done.wait [#allocation3], 128  }
  0x3c   :  { %763 = vsyncadd [#allocation3], 4294967168 }
  0x3d   :  { %764 = dma.done.wait [#allocation6], 272  }
  0x3e   :  { %765 = vsyncadd [#allocation6], 4294967024 }
  0x3f   :  { %766 = dma.done.wait [#allocation9], 4096  }
  0x40   :  { %767 = vsyncadd [#allocation9], 4294963200  ;;  %v779_v0 = vmov 0.0   ;;  %vm780_vm0 = vmmov 0   ;;  %v600_v1 = vld [vmem:[#allocation5 + $0x8] sm:$0xff]   ;;  %v601_v2 = vld [vmem:[#allocation5] sm:$0xff]   ;;  %v184_v47 = vlaneseq }
  0x41   :  { %579 = vmatprep.subr.bf16.mxu0 %v779_v0  ;;  %583 = vmatprep.mubr.msk.bf16.mxu0 %vm780_vm0, %v779_v0  ;;  %v93_v3 = vld [vmem:[#allocation2] sm:$0xff]  ;;  %v602_v4 = vld [vmem:[#allocation8 + $0x74] ss:$8 sps:$4 sm:$0xff]   ;;  %v604_v5 = vld [vmem:[#allocation8 + $0x70] ss:$8 sps:$4 sm:$0xff]   ;;  %vm118_vm1 = vcmask 261120  }
  0x42   :  { %580 = vmatpush3.bf16.msra.mxu0 %v600_v1  ;;  %v605_v6 = vld [vmem:[#allocation8 + $0x64] ss:$8 sps:$4 sm:$0xff]   ;;  %v94_v7 = vpack.c.bf16 %v93_v3, %v93_v3  ;;  %274 = vmatprep.subr.bf16.mxu1 %v602_v4  ;;  %v607_v8 = vld [vmem:[#allocation8 + $0x60] ss:$8 sps:$4 sm:$0xff]   ;;  %v608_v9 = vld [vmem:[#allocation8 + $0x54] ss:$8 sps:$4 sm:$0xff]  }
  0x43   :  { %581 = vmatprep.subr.bf16.mxu0 %v779_v0  ;;  %275 = vmatpush1.bf16.msra.mxu1 %v604_v5  ;;  %v610_v10 = vld [vmem:[#allocation8 + $0x50] ss:$8 sps:$4 sm:$0xff]   ;;  %v611_v11 = vld [vmem:[#allocation8 + $0x44] ss:$8 sps:$4 sm:$0xff]   ;;  %v613_v12 = vld [vmem:[#allocation8 + $0x40] ss:$8 sps:$4 sm:$0xff]  }
  0x44   :  { %276 = vmatprep.subr.bf16.mxu1 %v605_v6  ;;  %v614_v13 = vld [vmem:[#allocation8 + $0x34] ss:$8 sps:$4 sm:$0xff]   ;;  %v616_v14 = vld [vmem:[#allocation8 + $0x30] ss:$8 sps:$4 sm:$0xff]   ;;  %v617_v15 = vld [vmem:[#allocation8 + $0x24] ss:$8 sps:$4 sm:$0xff]  }
  0x45   :  { %v619_v16 = vld [vmem:[#allocation8 + $0x20] ss:$8 sps:$4 sm:$0xff]   ;;  %v620_v17 = vld [vmem:[#allocation8 + $0x14] ss:$8 sps:$4 sm:$0xff]   ;;  %v622_v18 = vld [vmem:[#allocation8 + $0x10] ss:$8 sps:$4 sm:$0xff]  }
  0x46   :  { %582 = vmatpush3.bf16.msra.mxu0 %v601_v2  ;;  %v623_v19 = vld [vmem:[#allocation8 + $0x4] ss:$8 sps:$4 sm:$0xff]   ;;  %v625_v20 = vld [vmem:[#allocation8] ss:$8 sps:$4 sm:$0xff]   ;;  %v781_v21 = vmov 0   ;;  %v626_v22 = vld [vmem:[#allocation10 + $0x78] sm:$0xff]  }
  0x47   :  { %277 = vmatpush1.bf16.msra.mxu1 %v607_v8  ;;  %306 = vmatprep.mubr.bf16.mxu1 %v781_v21  ;;  %v627_v23 = vld [vmem:[#allocation10 + $0x38] sm:$0xff]   ;;  %v628_v24 = vld [vmem:[#allocation10 + $0x70] sm:$0xff]   ;;  %v630_v26 = vld [vmem:[#allocation10 + $0x68] sm:$0xff]   ;;  %v185_v48 = vshrl.u32 %v184_v47, 7  ;;  %s782_s28 = smov [#allocation11]  }
  0x48   :  { %278 = vmatprep.subr.bf16.mxu1 %v608_v9  ;;  %557 = vmatprep.subr.bf16.mxu0 %v626_v22  ;;  %v629_v25 = vld [vmem:[#allocation10 + $0x30] sm:$0xff]   ;;  %v631_v27 = vld [vmem:[#allocation10 + $0x28] sm:$0xff]   ;;  %v632_v28 = vld [vmem:[#allocation10 + $0x60] sm:$0xff]   ;;  %s506_s30 = sshll.u32 %s782_s28, 4  ;;  %s507_s30 = int_to_ptr.vmem [resolvable:$true] %s506_s30 }
  0x49   :  { %584 = vmatmul.mubr.msk.bf16.vlgmr.msra.gmra.mxu0 %vm118_vm1, %v94_v7  ;;  %v633_v29 = vld [vmem:[#allocation10 + $0x20] sm:$0xff]   ;;  %v634_v30 = vld [vmem:[#allocation10 + $0x58] sm:$0xff]   ;;  %v636_v32 = vld [vmem:[#allocation10 + $0x50] sm:$0xff]   ;;  %v186_v49 = vsub.s32 0, %v185_v48  ;;  %v190_v51 = vsub.s32 1, %v185_v48  ;;  %s742_s8 = scalar_lea.vmem %s507_s30, 64  ;;  %p747_p12 = scmp.lt.s32.totalorder %s507_s30, %s507_s30 }
  0x4a   :  { %558 = vmatpush3.bf16.msra.mxu0 %v627_v23  ;;  %v635_v31 = vld [vmem:[#allocation10 + $0x18] sm:$0xff]   ;;  %v637_v42 = vld [vmem:[#allocation10 + $0x10] sm:$0xff]   ;;  %v638_v43 = vld [vmem:[#allocation10 + $0x48] sm:$0xff]   ;;  %p743_p11 = scmp.ne.s32.totalorder %s507_s30, %s742_s8  ;;  %p748_p13 = scmp.lt.s32.totalorder %s742_s8, %s742_s8 }
  0x4b   :  { %279 = vmatpush1.bf16.msra.mxu1 %v610_v10  ;;  %559 = vmatprep.subr.bf16.mxu0 %v628_v24  ;;  %v517_v33 = vld [vmem:[#allocation7] ss:$0 sm:$0xff]  ;;  %v639_v44 = vld [vmem:[#allocation10 + $0x8] sm:$0xff]   ;;  %v640_v45 = vld [vmem:[#allocation10 + $0x40] sm:$0xff]  }
  0x4c   :  { %280 = vmatprep.subr.bf16.mxu1 %v611_v11  ;;  %v641_v46 = vld [vmem:[#allocation10] sm:$0xff]   ;;  %p749_p0 = por %p748_p13, %p747_p12 }
  0x4d   :  { %v182_v50 = vld [vmem:[%s857_s4] sm:$0x3] }
  0x4e   :  { %560 = vmatpush3.bf16.msra.mxu0 %v629_v25  ;;  %v187_v52 = vrot.slane %v182_v50, %v186_v49  ;;  %v191_v53 = vrot.slane %v182_v50, %v190_v51  ;;  %v537_v3 = vld [vmem:[%s859_s6] ss:$0 sm:$0xff]  ;;  %p750_p1 = pnand %p749_p0, %p743_p11 }
  0x4f   :  { %281 = vmatpush1.bf16.msra.mxu1 %v613_v12  ;;  %561 = vmatprep.subr.bf16.mxu0 %v630_v26 }
  0x50   :  { %282 = vmatprep.subr.bf16.mxu1 %v614_v13 }
  0x52   :  { %562 = vmatpush3.bf16.msra.mxu0 %v631_v27 }
  0x53   :  { %283 = vmatpush1.bf16.msra.mxu1 %v616_v14  ;;  %563 = vmatprep.subr.bf16.mxu0 %v632_v28 }
  0x54   :  { %284 = vmatprep.subr.bf16.mxu1 %v617_v15 }
  0x56   :  { %564 = vmatpush3.bf16.msra.mxu0 %v633_v29 }
  0x57   :  { %285 = vmatpush1.bf16.msra.mxu1 %v619_v16  ;;  %565 = vmatprep.subr.bf16.mxu0 %v634_v30 }
  0x58   :  { %286 = vmatprep.subr.bf16.mxu1 %v620_v17 }
  0x5a   :  { %566 = vmatpush3.bf16.msra.mxu0 %v635_v31 }
  0x5b   :  { %287 = vmatpush1.bf16.msra.mxu1 %v622_v18  ;;  %567 = vmatprep.subr.bf16.mxu0 %v636_v32 }
  0x5c   :  { %288 = vmatprep.subr.bf16.mxu1 %v623_v19 }
  0x5e   :  { %568 = vmatpush3.bf16.msra.mxu0 %v637_v42 }
  0x5f   :  { %289 = vmatpush1.bf16.msra.mxu1 %v625_v20  ;;  %569 = vmatprep.subr.bf16.mxu0 %v638_v43 }
  0x62   :  { %570 = vmatpush3.bf16.msra.mxu0 %v639_v44 }
  0x63   :  { %571 = vmatprep.subr.bf16.mxu0 %v640_v45 }
  0x66   :  { %572 = vmatpush3.bf16.msra.mxu0 %v641_v46 }
 0x109   :  { %v156_v34 = vpop.f32.mrf.mxu0 }
 0x10a   :  { %v157_v35 = vadd.f32 %v517_v33, %v156_v34 }
 0x10b   :  { %v585_v36 = vpop.f32.mrf.mxu0 }
 0x10c   :  { %v162_v37 = vpack.c.bf16 %v157_v35, %v157_v35 }
 0x10d   :  { %v159_v38 = vpop.f32.mrf.mxu0 }
 0x10e   :  { %v164_v39 = vmul.bf16 1045249613, %v162_v37  ;;  %vm163_vm2 = vcmp.gt.bf16.partialorder %v162_v37, 0 }
 0x10f   :  { %v586_v40 = vpop.f32.mrf.mxu0 }
 0x110   :  { %v165_v41 = vsel %vm163_vm2, %v162_v37, %v164_v39 }
 0x111   :  { %307 = vmatmul.mubr.bf16.vlgmr.msra.gmra.mxu1 %v165_v41 }
 0x1d1   :  { %v308_v54 = vpop.f32.mrf.mxu1 }
 0x1d2   :  { %v309_v55 = vadd.f32 %v308_v54, %v187_v52 }
 0x1d3   :  { %v310_v56 = vpop.f32.mrf.mxu1 }
 0x1d4   :  { %v315_v57 = vpack.c.bf16 %v309_v55, %v309_v55  ;;  %v311_v58 = vadd.f32 %v310_v56, %v191_v53 }
 0x1d5   :  { %v312_v59 = vpop.f32.mrf.mxu1 }
 0x1d6   :  { %v316_v60 = vpack.c.bf16 %v311_v58, %v311_v58  ;;  %v319_v61 = vmul.bf16 1045249613, %v315_v57  ;;  %vm317_vm3 = vcmp.gt.bf16.partialorder %v315_v57, 0 }
 0x1d7   :  { %v313_v62 = vpop.f32.mrf.mxu1 }
 0x1d8   :  { %v320_v63 = vmul.bf16 1045249613, %v316_v60  ;;  %vm318_vm4 = vcmp.gt.bf16.partialorder %v316_v60, 0  ;;  %v321_v1 = vsel %vm317_vm3, %v315_v57, %v319_v61 }
 0x1da   :  { %v322_v0 = vsel %vm318_vm4, %v316_v60, %v320_v63 }
 0x1db   :  { %490 = vmatprep.mubr.bf16.mxu0 %v322_v0 }
 0x1dc   :  { %491 = vmatmul.mubr.bf16.vlgmr.msra.gmra.mxu0 %v321_v1 }
 0x29c   :  { %v573_v2 = vpop.f32.mrf.mxu0 }
 0x29e   :  { %v574_v4 = vpop.f32.mrf.mxu0 }
 0x29f   :  { %v575_v5 = vadd.f32 %v574_v4, %v573_v2 }
 0x2a0   :  { %v576_v6 = vpop.f32.mrf.mxu0 }
 0x2a1   :  { %v493_v7 = vadd.f32 %v575_v5, %v537_v3 }
 0x2a2   :  { %v577_v8 = vpop.f32.mrf.mxu0 }
 0x2a3   :  { %v498_v9 = vpack.c.bf16 %v493_v7, %v493_v7 }
 0x2a5   :  { %499 = vst [vmem:[#allocation11] sm:$0xf] %v498_v9 }
 0x2a6   :  { %753 = shalt.err (!%p750_p1)
}
 0x2a7   :  { %509 = dma.vmem_to_hbm [thread:$0]  %s507_s30, 64, %s860_s7, [#allocation4]  }
 0x2a8   :  { %768 = dma.done.wait [#allocation4], 64  }
 0x2a9   :  { %769 = vsyncadd [#allocation4], 4294967232 }
 0x2aa   :  { %513 = vsyncpa [#allocation3], 1 }
 0x2ab   :  { %514 = vsyncpa [#allocation6], 1 }
 0x2ac   :  { %515 = vsyncpa [#allocation9], 1 }
 0x2ad   :  { %516 = vsyncpa [#allocation4], 1 }

</bundles_post_ra>
